<compile_context>
chip_gen: v6e
topology: v6e:2x2x1
jax: 0.10.0
libtpu: 0.0.40
codegen_flags: <defaults>
</compile_context>

<pallas_src>
import functools

import numpy as np
import jax
import jax.numpy as jnp
from jax import lax
from jax.experimental import pallas as pl
from jax.experimental.pallas import tpu as pltpu


def _double_conv_kernel(x_ref, mask_ref, w1_ref, b1_ref, w2_ref, b2_ref,
                        o_ref, p1_ref, p2_ref, *, H, W):
    """Fused [Conv3x3(pad=1) + folded BN + ReLU] x 2 for one batch element.

    x_ref   : (1, Cin, H*W)      f32   NCHW input, spatial flattened (lane-dense)
    mask_ref: (9, H*W)           f32   0/1 border masks, one row per 3x3 tap
    w1_ref  : (Cmid_p, 9*Cin)    bf16  conv1 weights (BN1 folded), K=(dy,dx,ci)
    b1_ref  : (Cmid_p, 1)        f32   folded conv1 bias + BN1 shift
    w2_ref  : (Cout, 9*Cmid_p)   bf16  conv2 weights (BN2 folded), K=(dy,dx,ci)
    b2_ref  : (Cout, 1)          f32   folded conv2 bias + BN2 shift
    o_ref   : (1, Cout, H*W)     f32   channel-major, lane-dense output
    p1_ref  : (9*Cin, H*W)       bf16  scratch: conv1 im2col (transposed)
    p2_ref  : (9*Cmid_p, H*W)    bf16  scratch: conv2 im2col (transposed)
    """
    HW = H * W

    def im2col(src, patch_ref, c):
        # src: (c, HW) f32.  Writes the transposed im2col patch:
        #   patch[(dy*3+dx)*c + ci, h*W + w] = src[ci, (h+dy-1)*W + (w+dx-1)]
        # with zeros where the tap falls outside the image (SAME padding).
        # Each store is a full-lane-width (HW) row chunk; the shift runs on the
        # XLU via pltpu.roll, the border zeroing is one VPU multiply.
        for dy in range(3):
            for dx in range(3):
                k = dy * 3 + dx
                s = (dy - 1) * W + (dx - 1)          # flat-spatial tap offset
                tap = src if s == 0 else pltpu.roll(src, shift=(-s) % HW, axis=1)
                tap = tap * mask_ref[k:k + 1, :]     # zero out-of-image taps
                patch_ref[k * c:(k + 1) * c, :] = tap.astype(patch_ref.dtype)

    # --- Conv1 + folded BN1 + ReLU: one MXU matmul, (Cmid_p,9Cin)x(9Cin,HW) ---
    im2col(x_ref[0], p1_ref, x_ref.shape[1])
    h1 = jnp.dot(w1_ref[...], p1_ref[...], preferred_element_type=jnp.float32)
    h1 = jnp.maximum(h1 + b1_ref[...], 0.0)          # (Cmid_p, HW) f32

    # --- Conv2 + folded BN2 + ReLU: one MXU matmul, (Cout,9Cmid)x(9Cmid,HW) ---
    # Intermediate never leaves VMEM; it is bf16-quantized at the patch store.
    im2col(h1, p2_ref, w1_ref.shape[0])
    h2 = jnp.dot(w2_ref[...], p2_ref[...], preferred_element_type=jnp.float32)
    # NOTE: switch o_ref/out_shape to bf16 to halve output HBM writeback if the
    # consumer accepts bf16; kept f32 here to match the PyTorch module.
    o_ref[0] = jnp.maximum(h2 + b2_ref[...], 0.0)    # lane-dense (Cout, HW)


def _round_up(x, m):
    return ((x + m - 1) // m) * m


def _make_tap_masks(H, W):
    """(9, H*W) f32 masks: mask[dy*3+dx, h*W+w] = 1 iff (h+dy-1, w+dx-1) in image."""
    m = np.zeros((9, H, W), np.float32)
    for dy in range(3):
        for dx in range(3):
            m[dy * 3 + dx,
              max(0, 1 - dy):min(H, H + 1 - dy),
              max(0, 1 - dx):min(W, W + 1 - dx)] = 1.0
    return m.reshape(9, H * W)


def _fold_bn_into_conv(w_oihw, conv_b, gamma, beta, mean, var, *, eps=1e-5,
                       cin_pad=None, cout_pad=None):
    """Fold eval-mode BN into the conv.

    Returns (bf16 weight matrix (Cout[_p], 9*Cin[_p]) with K ordered (dy,dx,ci)
    to match the kernel's transposed im2col rows, f32 bias (Cout[_p], 1)).
    w_oihw is PyTorch-native (Cout, Cin, 3, 3).
    """
    cout, cin = w_oihw.shape[0], w_oihw.shape[1]
    s = gamma / jnp.sqrt(var + eps)                              # (Cout,)
    bias = beta + (conv_b - mean) * s                            # (Cout,)
    w = jnp.transpose(w_oihw, (0, 2, 3, 1)) * s[:, None, None, None]  # (Cout,3,3,Cin)
    if cin_pad is not None and cin_pad > cin:
        w = jnp.pad(w, ((0, 0), (0, 0), (0, 0), (0, cin_pad - cin)))
        cin = cin_pad
    w = w.reshape(cout, 9 * cin)
    if cout_pad is not None and cout_pad > cout:
        w = jnp.pad(w, ((0, cout_pad - cout), (0, 0)))
        bias = jnp.pad(bias, (0, cout_pad - cout))
        cout = cout_pad
    return w.astype(jnp.bfloat16), bias.reshape(cout, 1).astype(jnp.float32)


@jax.jit
def double_conv_forward(x_nchw, params):
    """PyTorch-equivalent double_conv forward (eval-mode BN): NCHW f32 -> NCHW f32."""
    N, Cin, H, W = x_nchw.shape
    HW = H * W
    Cmid, Cout = params["w1"].shape[0], params["w2"].shape[0]
    # Pad the internal (mid) channel count so im2col chunk stores and the MXU
    # K dim are sublane-aligned.  For production channel counts raise this to
    # 128 (v5e) / 256 (v6e, v7x) to get full MXU tiles.
    Cmid_p = _round_up(Cmid, 8)

    w1, b1 = _fold_bn_into_conv(params["w1"], params["b1"], params["gamma1"],
                                params["beta1"], params["mean1"], params["var1"],
                                cout_pad=Cmid_p)
    w2, b2 = _fold_bn_into_conv(params["w2"], params["b2"], params["gamma2"],
                                params["beta2"], params["mean2"], params["var2"],
                                cin_pad=Cmid_p)

    x_flat = x_nchw.reshape(N, Cin, HW)            # free reshape; stays NCHW f32
    masks = jnp.asarray(_make_tap_masks(H, W))     # (9, HW) compile-time constant

    # VMEM budget: scratch + double-buffered I/O blocks + weights (+ headroom).
    scratch_bytes = (9 * Cin + 9 * Cmid_p) * HW * 2
    io_bytes = 2 * (Cin * HW * 4 + Cout * HW * 4 + 9 * HW * 4)
    w_bytes = 2 * ((Cmid_p * 9 * Cin + Cout * 9 * Cmid_p) * 2 + (Cmid_p + Cout) * 4)
    vmem_limit = int(min(100 * 1024 * 1024,
                         max(8 * 1024 * 1024,
                             2 * (scratch_bytes + io_bytes + w_bytes))))

    kernel = functools.partial(_double_conv_kernel, H=H, W=W)
    out = pl.pallas_call(
        kernel,
        out_shape=jax.ShapeDtypeStruct((N, Cout, HW), jnp.float32),
        grid=(N,),
        in_specs=[
            pl.BlockSpec((1, Cin, HW), lambda n: (n, 0, 0)),
            pl.BlockSpec((9, HW), lambda n: (0, 0)),
            pl.BlockSpec((Cmid_p, 9 * Cin), lambda n: (0, 0)),
            pl.BlockSpec((Cmid_p, 1), lambda n: (0, 0)),
            pl.BlockSpec((Cout, 9 * Cmid_p), lambda n: (0, 0)),
            pl.BlockSpec((Cout, 1), lambda n: (0, 0)),
        ],
        out_specs=pl.BlockSpec((1, Cout, HW), lambda n: (n, 0, 0)),
        scratch_shapes=[
            pltpu.VMEM((9 * Cin, HW), jnp.bfloat16),     # conv1 im2col (transposed)
            pltpu.VMEM((9 * Cmid_p, HW), jnp.bfloat16),  # conv2 im2col (transposed)
        ],
        compiler_params=pltpu.CompilerParams(
            dimension_semantics=("parallel",),
            vmem_limit_bytes=vmem_limit),
    )(x_flat, masks, w1, b1, w2, b2)

    # (N, Cout, H*W) is already channel-major: reshape (free) gives NCHW.
    return out.reshape(N, Cout, H, W)


def init_double_conv_params(key, in_ch, out_ch):
    """Deterministic synthetic params in PyTorch-native layouts (OIHW etc.)."""
    ks = jax.random.split(key, 12)
    p = {}
    p["w1"] = 0.1 * jax.random.normal(ks[0], (out_ch, in_ch, 3, 3), jnp.float32)
    p["b1"] = 0.1 * jax.random.normal(ks[1], (out_ch,), jnp.float32)
    p["gamma1"] = 1.0 + 0.1 * jax.random.normal(ks[2], (out_ch,), jnp.float32)
    p["beta1"] = 0.1 * jax.random.normal(ks[3], (out_ch,), jnp.float32)
    p["mean1"] = 0.1 * jax.random.normal(ks[4], (out_ch,), jnp.float32)
    p["var1"] = 0.5 + jnp.abs(0.1 * jax.random.normal(ks[5], (out_ch,), jnp.float32))

    p["w2"] = 0.1 * jax.random.normal(ks[6], (out_ch, out_ch, 3, 3), jnp.float32)
    p["b2"] = 0.1 * jax.random.normal(ks[7], (out_ch,), jnp.float32)
    p["gamma2"] = 1.0 + 0.1 * jax.random.normal(ks[8], (out_ch,), jnp.float32)
    p["beta2"] = 0.1 * jax.random.normal(ks[9], (out_ch,), jnp.float32)
    p["mean2"] = 0.1 * jax.random.normal(ks[10], (out_ch,), jnp.float32)
    p["var2"] = 0.5 + jnp.abs(0.1 * jax.random.normal(ks[11], (out_ch,), jnp.float32))
    return p


def _reference_forward_bf16(x_nchw, params):
    """lax.conv reference using the SAME folded bf16 weights as the kernel."""
    cin = params["w1"].shape[1]
    cmid = params["w1"].shape[0]
    cout = params["w2"].shape[0]
    w1m, b1 = _fold_bn_into_conv(params["w1"], params["b1"], params["gamma1"],
                                 params["beta1"], params["mean1"], params["var1"])
    w2m, b2 = _fold_bn_into_conv(params["w2"], params["b2"], params["gamma2"],
                                 params["beta2"], params["mean2"], params["var2"])
    w1_hwio = jnp.transpose(w1m.reshape(cmid, 3, 3, cin), (1, 2, 3, 0))
    w2_hwio = jnp.transpose(w2m.reshape(cout, 3, 3, cmid), (1, 2, 3, 0))
    x = jnp.transpose(x_nchw, (0, 2, 3, 1)).astype(jnp.bfloat16)

    def conv_bias_relu(x, w, b):
        y = lax.conv_general_dilated(
            x, w, window_strides=(1, 1), padding="SAME",
            dimension_numbers=("NHWC", "HWIO", "NHWC"),
            preferred_element_type=jnp.float32)
        return jnp.maximum(y + b.reshape(1, 1, 1, -1), 0.0)

    y = conv_bias_relu(x, w1_hwio, b1)
    y = conv_bias_relu(y.astype(jnp.bfloat16), w2_hwio, b2)
    return jnp.transpose(y, (0, 3, 1, 2))


def _reference_forward_f32(x_nchw, params):
    """Pure-f32 PyTorch-semantics reference (conv -> BN eval -> ReLU, twice)."""
    x = jnp.transpose(x_nchw, (0, 2, 3, 1)).astype(jnp.float32)

    def block(x, w_oihw, cb, g, be, m, v):
        w = jnp.transpose(w_oihw, (2, 3, 1, 0))  # OIHW -> HWIO
        y = lax.conv_general_dilated(
            x, w, window_strides=(1, 1), padding="SAME",
            dimension_numbers=("NHWC", "HWIO", "NHWC"))
        y = y + cb
        y = g * (y - m) / jnp.sqrt(v + 1e-5) + be
        return jnp.maximum(y, 0.0)

    y = block(x, params["w1"], params["b1"], params["gamma1"],
              params["beta1"], params["mean1"], params["var1"])
    y = block(y, params["w2"], params["b2"], params["gamma2"],
              params["beta2"], params["mean2"], params["var2"])
    return jnp.transpose(y, (0, 3, 1, 2))


if __name__ == "__main__":
    key = jax.random.PRNGKey(0)
    k_x, k_p = jax.random.split(key)

    N, IN_CH, OUT_CH, H, W = 2, 4, 8, 16, 16
    x = jax.random.normal(k_x, (N, IN_CH, H, W), jnp.float32)  # NCHW like PyTorch
    params = init_double_conv_params(k_p, IN_CH, OUT_CH)

    out = jax.block_until_ready(double_conv_forward(x, params))
    assert out.shape == (N, OUT_CH, H, W), out.shape

    # Tight check vs. a lax.conv reference that uses the same folded bf16
    # weights / bf16-rounded activations (diffs only from f32 accumulation order).
    ref_bf16 = jax.block_until_ready(_reference_forward_bf16(x, params))
    assert jnp.allclose(out, ref_bf16, atol=3e-2, rtol=3e-2), \
        float(jnp.max(jnp.abs(out - ref_bf16)))

    # Loose semantic check vs. the pure-f32 conv->BN->ReLU reference (bounds the
    # intentional bf16 quantization of the matmul operands).
    ref_f32 = jax.block_until_ready(_reference_forward_f32(x, params))
    assert jnp.allclose(out, ref_f32, atol=1.5e-1, rtol=1e-1), \
        float(jnp.max(jnp.abs(out - ref_f32)))

    print("KERNEL_OK")
</pallas_src>

<mosaic_0001>
module attributes {stable_mosaic.version = 11 : i64} {
  func.func @_double_conv_kernel(%arg0: i32, %arg1: memref<1x4x256xf32, #tpu.memory_space<vmem>>, %arg2: memref<9x256xf32, #tpu.memory_space<vmem>>, %arg3: memref<8x36xbf16, #tpu.memory_space<vmem>>, %arg4: memref<8x1xf32, #tpu.memory_space<vmem>>, %arg5: memref<8x72xbf16, #tpu.memory_space<vmem>>, %arg6: memref<8x1xf32, #tpu.memory_space<vmem>>, %arg7: memref<1x8x256xf32, #tpu.memory_space<vmem>>, %arg8: memref<36x256xbf16, #tpu.memory_space<vmem>>, %arg9: memref<72x256xbf16, #tpu.memory_space<vmem>>) attributes {dimension_semantics = [#tpu.dimension_semantics<parallel>], iteration_bounds = array<i64: 2>, scalar_prefetch = 0 : i64, scratch_operands = 2 : i64, tpu.core_type = #tpu.core_type<tc>, window_params = [{transform_indices = @transform_0, window_bounds = array<i64: 1, 4, 256>}, {pipeline_mode = #tpu.pipeline_mode<synchronous>, transform_indices = @transform_1, window_bounds = array<i64: 9, 256>}, {pipeline_mode = #tpu.pipeline_mode<synchronous>, transform_indices = @transform_2, window_bounds = array<i64: 8, 36>}, {pipeline_mode = #tpu.pipeline_mode<synchronous>, transform_indices = @transform_3, window_bounds = array<i64: 8, 1>}, {pipeline_mode = #tpu.pipeline_mode<synchronous>, transform_indices = @transform_4, window_bounds = array<i64: 8, 72>}, {pipeline_mode = #tpu.pipeline_mode<synchronous>, transform_indices = @transform_5, window_bounds = array<i64: 8, 1>}, {transform_indices = @transform_6, window_bounds = array<i64: 1, 8, 256>}]} {
    %c0 = arith.constant 0 : index
    %c0_0 = arith.constant 0 : index
    %c0_1 = arith.constant 0 : index
    %0 = vector.load %arg1[%c0, %c0_0, %c0_1] : memref<1x4x256xf32, #tpu.memory_space<vmem>>, vector<1x4x256xf32>
    %1 = vector.shape_cast %0 : vector<1x4x256xf32> to vector<4x256xf32>
    %c17_i32 = arith.constant 17 : i32
    %2 = tpu.dynamic_rotate %1 by %c17_i32 dim 1 : vector<4x256xf32>, i32 -> vector<4x256xf32>
    %c0_2 = arith.constant 0 : index
    %c0_3 = arith.constant 0 : index
    %3 = vector.load %arg2[%c0_2, %c0_3] : memref<9x256xf32, #tpu.memory_space<vmem>>, vector<1x256xf32>
    %4 = vector.broadcast %3 : vector<1x256xf32> to vector<4x256xf32>
    %5 = arith.mulf %2, %4 : vector<4x256xf32>
    %6 = arith.truncf %5 : vector<4x256xf32> to vector<4x256xbf16>
    %c0_4 = arith.constant 0 : index
    %c0_5 = arith.constant 0 : index
    %7 = vector.load %arg8[%c0_4, %c0_5] : memref<36x256xbf16, #tpu.memory_space<vmem>>, vector<4x256xbf16>
    tpu.vector_store %arg8[%c0_4, %c0_5], %6 {strides = array<i32>} : memref<36x256xbf16, #tpu.memory_space<vmem>>, vector<4x256xbf16>,
    %c16_i32 = arith.constant 16 : i32
    %8 = tpu.dynamic_rotate %1 by %c16_i32 dim 1 : vector<4x256xf32>, i32 -> vector<4x256xf32>
    %c1 = arith.constant 1 : index
    %c0_6 = arith.constant 0 : index
    %9 = vector.load %arg2[%c1, %c0_6] : memref<9x256xf32, #tpu.memory_space<vmem>>, vector<1x256xf32>
    %10 = vector.broadcast %9 : vector<1x256xf32> to vector<4x256xf32>
    %11 = arith.mulf %8, %10 : vector<4x256xf32>
    %12 = arith.truncf %11 : vector<4x256xf32> to vector<4x256xbf16>
    %c4 = arith.constant 4 : index
    %c0_7 = arith.constant 0 : index
    %13 = vector.load %arg8[%c4, %c0_7] : memref<36x256xbf16, #tpu.memory_space<vmem>>, vector<4x256xbf16>
    tpu.vector_store %arg8[%c4, %c0_7], %12 {strides = array<i32>} : memref<36x256xbf16, #tpu.memory_space<vmem>>, vector<4x256xbf16>,
    %c15_i32 = arith.constant 15 : i32
    %14 = tpu.dynamic_rotate %1 by %c15_i32 dim 1 : vector<4x256xf32>, i32 -> vector<4x256xf32>
    %c2 = arith.constant 2 : index
    %c0_8 = arith.constant 0 : index
    %15 = vector.load %arg2[%c2, %c0_8] : memref<9x256xf32, #tpu.memory_space<vmem>>, vector<1x256xf32>
    %16 = vector.broadcast %15 : vector<1x256xf32> to vector<4x256xf32>
    %17 = arith.mulf %14, %16 : vector<4x256xf32>
    %18 = arith.truncf %17 : vector<4x256xf32> to vector<4x256xbf16>
    %c8 = arith.constant 8 : index
    %c0_9 = arith.constant 0 : index
    %19 = vector.load %arg8[%c8, %c0_9] : memref<36x256xbf16, #tpu.memory_space<vmem>>, vector<4x256xbf16>
    tpu.vector_store %arg8[%c8, %c0_9], %18 {strides = array<i32>} : memref<36x256xbf16, #tpu.memory_space<vmem>>, vector<4x256xbf16>,
    %c1_i32 = arith.constant 1 : i32
    %20 = tpu.dynamic_rotate %1 by %c1_i32 dim 1 : vector<4x256xf32>, i32 -> vector<4x256xf32>
    %c3 = arith.constant 3 : index
    %c0_10 = arith.constant 0 : index
    %21 = vector.load %arg2[%c3, %c0_10] : memref<9x256xf32, #tpu.memory_space<vmem>>, vector<1x256xf32>
    %22 = vector.broadcast %21 : vector<1x256xf32> to vector<4x256xf32>
    %23 = arith.mulf %20, %22 : vector<4x256xf32>
    %24 = arith.truncf %23 : vector<4x256xf32> to vector<4x256xbf16>
    %c12 = arith.constant 12 : index
    %c0_11 = arith.constant 0 : index
    %25 = vector.load %arg8[%c12, %c0_11] : memref<36x256xbf16, #tpu.memory_space<vmem>>, vector<4x256xbf16>
    tpu.vector_store %arg8[%c12, %c0_11], %24 {strides = array<i32>} : memref<36x256xbf16, #tpu.memory_space<vmem>>, vector<4x256xbf16>,
    %c4_12 = arith.constant 4 : index
    %c0_13 = arith.constant 0 : index
    %26 = vector.load %arg2[%c4_12, %c0_13] : memref<9x256xf32, #tpu.memory_space<vmem>>, vector<1x256xf32>
    %27 = vector.broadcast %26 : vector<1x256xf32> to vector<4x256xf32>
    %28 = arith.mulf %1, %27 : vector<4x256xf32>
    %29 = arith.truncf %28 : vector<4x256xf32> to vector<4x256xbf16>
    %c16 = arith.constant 16 : index
    %c0_14 = arith.constant 0 : index
    %30 = vector.load %arg8[%c16, %c0_14] : memref<36x256xbf16, #tpu.memory_space<vmem>>, vector<4x256xbf16>
    tpu.vector_store %arg8[%c16, %c0_14], %29 {strides = array<i32>} : memref<36x256xbf16, #tpu.memory_space<vmem>>, vector<4x256xbf16>,
    %c255_i32 = arith.constant 255 : i32
    %31 = tpu.dynamic_rotate %1 by %c255_i32 dim 1 : vector<4x256xf32>, i32 -> vector<4x256xf32>
    %c5 = arith.constant 5 : index
    %c0_15 = arith.constant 0 : index
    %32 = vector.load %arg2[%c5, %c0_15] : memref<9x256xf32, #tpu.memory_space<vmem>>, vector<1x256xf32>
    %33 = vector.broadcast %32 : vector<1x256xf32> to vector<4x256xf32>
    %34 = arith.mulf %31, %33 : vector<4x256xf32>
    %35 = arith.truncf %34 : vector<4x256xf32> to vector<4x256xbf16>
    %c20 = arith.constant 20 : index
    %c0_16 = arith.constant 0 : index
    %36 = vector.load %arg8[%c20, %c0_16] : memref<36x256xbf16, #tpu.memory_space<vmem>>, vector<4x256xbf16>
    tpu.vector_store %arg8[%c20, %c0_16], %35 {strides = array<i32>} : memref<36x256xbf16, #tpu.memory_space<vmem>>, vector<4x256xbf16>,
    %c241_i32 = arith.constant 241 : i32
    %37 = tpu.dynamic_rotate %1 by %c241_i32 dim 1 : vector<4x256xf32>, i32 -> vector<4x256xf32>
    %c6 = arith.constant 6 : index
    %c0_17 = arith.constant 0 : index
    %38 = vector.load %arg2[%c6, %c0_17] : memref<9x256xf32, #tpu.memory_space<vmem>>, vector<1x256xf32>
    %39 = vector.broadcast %38 : vector<1x256xf32> to vector<4x256xf32>
    %40 = arith.mulf %37, %39 : vector<4x256xf32>
    %41 = arith.truncf %40 : vector<4x256xf32> to vector<4x256xbf16>
    %c24 = arith.constant 24 : index
    %c0_18 = arith.constant 0 : index
    %42 = vector.load %arg8[%c24, %c0_18] : memref<36x256xbf16, #tpu.memory_space<vmem>>, vector<4x256xbf16>
    tpu.vector_store %arg8[%c24, %c0_18], %41 {strides = array<i32>} : memref<36x256xbf16, #tpu.memory_space<vmem>>, vector<4x256xbf16>,
    %c240_i32 = arith.constant 240 : i32
    %43 = tpu.dynamic_rotate %1 by %c240_i32 dim 1 : vector<4x256xf32>, i32 -> vector<4x256xf32>
    %c7 = arith.constant 7 : index
    %c0_19 = arith.constant 0 : index
    %44 = vector.load %arg2[%c7, %c0_19] : memref<9x256xf32, #tpu.memory_space<vmem>>, vector<1x256xf32>
    %45 = vector.broadcast %44 : vector<1x256xf32> to vector<4x256xf32>
    %46 = arith.mulf %43, %45 : vector<4x256xf32>
    %47 = arith.truncf %46 : vector<4x256xf32> to vector<4x256xbf16>
    %c28 = arith.constant 28 : index
    %c0_20 = arith.constant 0 : index
    %48 = vector.load %arg8[%c28, %c0_20] : memref<36x256xbf16, #tpu.memory_space<vmem>>, vector<4x256xbf16>
    tpu.vector_store %arg8[%c28, %c0_20], %47 {strides = array<i32>} : memref<36x256xbf16, #tpu.memory_space<vmem>>, vector<4x256xbf16>,
    %c239_i32 = arith.constant 239 : i32
    %49 = tpu.dynamic_rotate %1 by %c239_i32 dim 1 : vector<4x256xf32>, i32 -> vector<4x256xf32>
    %c8_21 = arith.constant 8 : index
    %c0_22 = arith.constant 0 : index
    %50 = vector.load %arg2[%c8_21, %c0_22] : memref<9x256xf32, #tpu.memory_space<vmem>>, vector<1x256xf32>
    %51 = vector.broadcast %50 : vector<1x256xf32> to vector<4x256xf32>
    %52 = arith.mulf %49, %51 : vector<4x256xf32>
    %53 = arith.truncf %52 : vector<4x256xf32> to vector<4x256xbf16>
    %c32 = arith.constant 32 : index
    %c0_23 = arith.constant 0 : index
    %54 = vector.load %arg8[%c32, %c0_23] : memref<36x256xbf16, #tpu.memory_space<vmem>>, vector<4x256xbf16>
    tpu.vector_store %arg8[%c32, %c0_23], %53 {strides = array<i32>} : memref<36x256xbf16, #tpu.memory_space<vmem>>, vector<4x256xbf16>,
    %c0_24 = arith.constant 0 : index
    %c0_25 = arith.constant 0 : index
    %55 = vector.load %arg3[%c0_24, %c0_25] : memref<8x36xbf16, #tpu.memory_space<vmem>>, vector<8x36xbf16>
    %c0_26 = arith.constant 0 : index
    %c0_27 = arith.constant 0 : index
    %56 = vector.load %arg8[%c0_26, %c0_27] : memref<36x256xbf16, #tpu.memory_space<vmem>>, vector<36x256xbf16>
    %cst = arith.constant dense<0.000000e+00> : vector<8x256xf32>
    %57 = tpu.matmul %55, %56, %cst {dimension_numbers = #tpu.dot_dimension_numbers<[1], [0], [0], [1], [0, 0, 1, 1], [], []>} : vector<8x36xbf16>, vector<36x256xbf16>, vector<8x256xf32> -> vector<8x256xf32>
    %c0_28 = arith.constant 0 : index
    %c0_29 = arith.constant 0 : index
    %58 = vector.load %arg4[%c0_28, %c0_29] : memref<8x1xf32, #tpu.memory_space<vmem>>, vector<8x1xf32>
    %59 = vector.broadcast %58 : vector<8x1xf32> to vector<8x256xf32>
    %60 = arith.addf %57, %59 : vector<8x256xf32>
    %cst_30 = arith.constant 0.000000e+00 : f32
    %61 = vector.broadcast %cst_30 : f32 to vector<8x256xf32>
    %62 = arith.maximumf %60, %61 : vector<8x256xf32>
    %c17_i32_31 = arith.constant 17 : i32
    %63 = tpu.dynamic_rotate %62 by %c17_i32_31 dim 1 : vector<8x256xf32>, i32 -> vector<8x256xf32>
    %c0_32 = arith.constant 0 : index
    %c0_33 = arith.constant 0 : index
    %64 = vector.load %arg2[%c0_32, %c0_33] : memref<9x256xf32, #tpu.memory_space<vmem>>, vector<1x256xf32>
    %65 = vector.broadcast %64 : vector<1x256xf32> to vector<8x256xf32>
    %66 = arith.mulf %63, %65 : vector<8x256xf32>
    %67 = arith.truncf %66 : vector<8x256xf32> to vector<8x256xbf16>
    %c0_34 = arith.constant 0 : index
    %c0_35 = arith.constant 0 : index
    %68 = vector.load %arg9[%c0_34, %c0_35] : memref<72x256xbf16, #tpu.memory_space<vmem>>, vector<8x256xbf16>
    tpu.vector_store %arg9[%c0_34, %c0_35], %67 {strides = array<i32>} : memref<72x256xbf16, #tpu.memory_space<vmem>>, vector<8x256xbf16>,
    %c16_i32_36 = arith.constant 16 : i32
    %69 = tpu.dynamic_rotate %62 by %c16_i32_36 dim 1 : vector<8x256xf32>, i32 -> vector<8x256xf32>
    %c1_37 = arith.constant 1 : index
    %c0_38 = arith.constant 0 : index
    %70 = vector.load %arg2[%c1_37, %c0_38] : memref<9x256xf32, #tpu.memory_space<vmem>>, vector<1x256xf32>
    %71 = vector.broadcast %70 : vector<1x256xf32> to vector<8x256xf32>
    %72 = arith.mulf %69, %71 : vector<8x256xf32>
    %73 = arith.truncf %72 : vector<8x256xf32> to vector<8x256xbf16>
    %c8_39 = arith.constant 8 : index
    %c0_40 = arith.constant 0 : index
    %74 = vector.load %arg9[%c8_39, %c0_40] : memref<72x256xbf16, #tpu.memory_space<vmem>>, vector<8x256xbf16>
    tpu.vector_store %arg9[%c8_39, %c0_40], %73 {strides = array<i32>} : memref<72x256xbf16, #tpu.memory_space<vmem>>, vector<8x256xbf16>,
    %c15_i32_41 = arith.constant 15 : i32
    %75 = tpu.dynamic_rotate %62 by %c15_i32_41 dim 1 : vector<8x256xf32>, i32 -> vector<8x256xf32>
    %c2_42 = arith.constant 2 : index
    %c0_43 = arith.constant 0 : index
    %76 = vector.load %arg2[%c2_42, %c0_43] : memref<9x256xf32, #tpu.memory_space<vmem>>, vector<1x256xf32>
    %77 = vector.broadcast %76 : vector<1x256xf32> to vector<8x256xf32>
    %78 = arith.mulf %75, %77 : vector<8x256xf32>
    %79 = arith.truncf %78 : vector<8x256xf32> to vector<8x256xbf16>
    %c16_44 = arith.constant 16 : index
    %c0_45 = arith.constant 0 : index
    %80 = vector.load %arg9[%c16_44, %c0_45] : memref<72x256xbf16, #tpu.memory_space<vmem>>, vector<8x256xbf16>
    tpu.vector_store %arg9[%c16_44, %c0_45], %79 {strides = array<i32>} : memref<72x256xbf16, #tpu.memory_space<vmem>>, vector<8x256xbf16>,
    %c1_i32_46 = arith.constant 1 : i32
    %81 = tpu.dynamic_rotate %62 by %c1_i32_46 dim 1 : vector<8x256xf32>, i32 -> vector<8x256xf32>
    %c3_47 = arith.constant 3 : index
    %c0_48 = arith.constant 0 : index
    %82 = vector.load %arg2[%c3_47, %c0_48] : memref<9x256xf32, #tpu.memory_space<vmem>>, vector<1x256xf32>
    %83 = vector.broadcast %82 : vector<1x256xf32> to vector<8x256xf32>
    %84 = arith.mulf %81, %83 : vector<8x256xf32>
    %85 = arith.truncf %84 : vector<8x256xf32> to vector<8x256xbf16>
    %c24_49 = arith.constant 24 : index
    %c0_50 = arith.constant 0 : index
    %86 = vector.load %arg9[%c24_49, %c0_50] : memref<72x256xbf16, #tpu.memory_space<vmem>>, vector<8x256xbf16>
    tpu.vector_store %arg9[%c24_49, %c0_50], %85 {strides = array<i32>} : memref<72x256xbf16, #tpu.memory_space<vmem>>, vector<8x256xbf16>,
    %c4_51 = arith.constant 4 : index
    %c0_52 = arith.constant 0 : index
    %87 = vector.load %arg2[%c4_51, %c0_52] : memref<9x256xf32, #tpu.memory_space<vmem>>, vector<1x256xf32>
    %88 = vector.broadcast %87 : vector<1x256xf32> to vector<8x256xf32>
    %89 = arith.mulf %62, %88 : vector<8x256xf32>
    %90 = arith.truncf %89 : vector<8x256xf32> to vector<8x256xbf16>
    %c32_53 = arith.constant 32 : index
    %c0_54 = arith.constant 0 : index
    %91 = vector.load %arg9[%c32_53, %c0_54] : memref<72x256xbf16, #tpu.memory_space<vmem>>, vector<8x256xbf16>
    tpu.vector_store %arg9[%c32_53, %c0_54], %90 {strides = array<i32>} : memref<72x256xbf16, #tpu.memory_space<vmem>>, vector<8x256xbf16>,
    %c255_i32_55 = arith.constant 255 : i32
    %92 = tpu.dynamic_rotate %62 by %c255_i32_55 dim 1 : vector<8x256xf32>, i32 -> vector<8x256xf32>
    %c5_56 = arith.constant 5 : index
    %c0_57 = arith.constant 0 : index
    %93 = vector.load %arg2[%c5_56, %c0_57] : memref<9x256xf32, #tpu.memory_space<vmem>>, vector<1x256xf32>
    %94 = vector.broadcast %93 : vector<1x256xf32> to vector<8x256xf32>
    %95 = arith.mulf %92, %94 : vector<8x256xf32>
    %96 = arith.truncf %95 : vector<8x256xf32> to vector<8x256xbf16>
    %c40 = arith.constant 40 : index
    %c0_58 = arith.constant 0 : index
    %97 = vector.load %arg9[%c40, %c0_58] : memref<72x256xbf16, #tpu.memory_space<vmem>>, vector<8x256xbf16>
    tpu.vector_store %arg9[%c40, %c0_58], %96 {strides = array<i32>} : memref<72x256xbf16, #tpu.memory_space<vmem>>, vector<8x256xbf16>,
    %c241_i32_59 = arith.constant 241 : i32
    %98 = tpu.dynamic_rotate %62 by %c241_i32_59 dim 1 : vector<8x256xf32>, i32 -> vector<8x256xf32>
    %c6_60 = arith.constant 6 : index
    %c0_61 = arith.constant 0 : index
    %99 = vector.load %arg2[%c6_60, %c0_61] : memref<9x256xf32, #tpu.memory_space<vmem>>, vector<1x256xf32>
    %100 = vector.broadcast %99 : vector<1x256xf32> to vector<8x256xf32>
    %101 = arith.mulf %98, %100 : vector<8x256xf32>
    %102 = arith.truncf %101 : vector<8x256xf32> to vector<8x256xbf16>
    %c48 = arith.constant 48 : index
    %c0_62 = arith.constant 0 : index
    %103 = vector.load %arg9[%c48, %c0_62] : memref<72x256xbf16, #tpu.memory_space<vmem>>, vector<8x256xbf16>
    tpu.vector_store %arg9[%c48, %c0_62], %102 {strides = array<i32>} : memref<72x256xbf16, #tpu.memory_space<vmem>>, vector<8x256xbf16>,
    %c240_i32_63 = arith.constant 240 : i32
    %104 = tpu.dynamic_rotate %62 by %c240_i32_63 dim 1 : vector<8x256xf32>, i32 -> vector<8x256xf32>
    %c7_64 = arith.constant 7 : index
    %c0_65 = arith.constant 0 : index
    %105 = vector.load %arg2[%c7_64, %c0_65] : memref<9x256xf32, #tpu.memory_space<vmem>>, vector<1x256xf32>
    %106 = vector.broadcast %105 : vector<1x256xf32> to vector<8x256xf32>
    %107 = arith.mulf %104, %106 : vector<8x256xf32>
    %108 = arith.truncf %107 : vector<8x256xf32> to vector<8x256xbf16>
    %c56 = arith.constant 56 : index
    %c0_66 = arith.constant 0 : index
    %109 = vector.load %arg9[%c56, %c0_66] : memref<72x256xbf16, #tpu.memory_space<vmem>>, vector<8x256xbf16>
    tpu.vector_store %arg9[%c56, %c0_66], %108 {strides = array<i32>} : memref<72x256xbf16, #tpu.memory_space<vmem>>, vector<8x256xbf16>,
    %c239_i32_67 = arith.constant 239 : i32
    %110 = tpu.dynamic_rotate %62 by %c239_i32_67 dim 1 : vector<8x256xf32>, i32 -> vector<8x256xf32>
    %c8_68 = arith.constant 8 : index
    %c0_69 = arith.constant 0 : index
    %111 = vector.load %arg2[%c8_68, %c0_69] : memref<9x256xf32, #tpu.memory_space<vmem>>, vector<1x256xf32>
    %112 = vector.broadcast %111 : vector<1x256xf32> to vector<8x256xf32>
    %113 = arith.mulf %110, %112 : vector<8x256xf32>
    %114 = arith.truncf %113 : vector<8x256xf32> to vector<8x256xbf16>
    %c64 = arith.constant 64 : index
    %c0_70 = arith.constant 0 : index
    %115 = vector.load %arg9[%c64, %c0_70] : memref<72x256xbf16, #tpu.memory_space<vmem>>, vector<8x256xbf16>
    tpu.vector_store %arg9[%c64, %c0_70], %114 {strides = array<i32>} : memref<72x256xbf16, #tpu.memory_space<vmem>>, vector<8x256xbf16>,
    %c0_71 = arith.constant 0 : index
    %c0_72 = arith.constant 0 : index
    %116 = vector.load %arg5[%c0_71, %c0_72] : memref<8x72xbf16, #tpu.memory_space<vmem>>, vector<8x72xbf16>
    %c0_73 = arith.constant 0 : index
    %c0_74 = arith.constant 0 : index
    %117 = vector.load %arg9[%c0_73, %c0_74] : memref<72x256xbf16, #tpu.memory_space<vmem>>, vector<72x256xbf16>
    %cst_75 = arith.constant dense<0.000000e+00> : vector<8x256xf32>
    %118 = tpu.matmul %116, %117, %cst_75 {dimension_numbers = #tpu.dot_dimension_numbers<[1], [0], [0], [1], [0, 0, 1, 1], [], []>} : vector<8x72xbf16>, vector<72x256xbf16>, vector<8x256xf32> -> vector<8x256xf32>
    %c0_76 = arith.constant 0 : index
    %c0_77 = arith.constant 0 : index
    %119 = vector.load %arg6[%c0_76, %c0_77] : memref<8x1xf32, #tpu.memory_space<vmem>>, vector<8x1xf32>
    %120 = vector.broadcast %119 : vector<8x1xf32> to vector<8x256xf32>
    %121 = arith.addf %118, %120 : vector<8x256xf32>
    %cst_78 = arith.constant 0.000000e+00 : f32
    %122 = vector.broadcast %cst_78 : f32 to vector<8x256xf32>
    %123 = arith.maximumf %121, %122 : vector<8x256xf32>
    %c0_79 = arith.constant 0 : index
    %c0_80 = arith.constant 0 : index
    %c0_81 = arith.constant 0 : index
    %124 = vector.load %arg7[%c0_79, %c0_80, %c0_81] : memref<1x8x256xf32, #tpu.memory_space<vmem>>, vector<1x8x256xf32>
    %125 = vector.shape_cast %124 : vector<1x8x256xf32> to vector<8x256xf32>
    %126 = vector.shape_cast %123 : vector<8x256xf32> to vector<1x8x256xf32>
    tpu.vector_store %arg7[%c0_79, %c0_80, %c0_81], %126 {strides = array<i32>} : memref<1x8x256xf32, #tpu.memory_space<vmem>>, vector<1x8x256xf32>,
    return
  }
  func.func @transform_0(%arg0: i32) -> (i32, i32, i32) {
    %c0_i32 = arith.constant 0 : i32
    %c0_i32_0 = arith.constant 0 : i32
    %c0_i32_1 = arith.constant 0 : i32
    return %arg0, %c0_i32, %c0_i32_0 : i32, i32, i32
  }
  func.func @transform_1(%arg0: i32) -> (i32, i32) {
    %c0_i32 = arith.constant 0 : i32
    %c0_i32_0 = arith.constant 0 : i32
    %c0_i32_1 = arith.constant 0 : i32
    return %c0_i32, %c0_i32_0 : i32, i32
  }
  func.func @transform_2(%arg0: i32) -> (i32, i32) {
    %c0_i32 = arith.constant 0 : i32
    %c0_i32_0 = arith.constant 0 : i32
    %c0_i32_1 = arith.constant 0 : i32
    return %c0_i32, %c0_i32_0 : i32, i32
  }
  func.func @transform_3(%arg0: i32) -> (i32, i32) {
    %c0_i32 = arith.constant 0 : i32
    %c0_i32_0 = arith.constant 0 : i32
    %c0_i32_1 = arith.constant 0 : i32
    return %c0_i32, %c0_i32_0 : i32, i32
  }
  func.func @transform_4(%arg0: i32) -> (i32, i32) {
    %c0_i32 = arith.constant 0 : i32
    %c0_i32_0 = arith.constant 0 : i32
    %c0_i32_1 = arith.constant 0 : i32
    return %c0_i32, %c0_i32_0 : i32, i32
  }
  func.func @transform_5(%arg0: i32) -> (i32, i32) {
    %c0_i32 = arith.constant 0 : i32
    %c0_i32_0 = arith.constant 0 : i32
    %c0_i32_1 = arith.constant 0 : i32
    return %c0_i32, %c0_i32_0 : i32, i32
  }
  func.func @transform_6(%arg0: i32) -> (i32, i32, i32) {
    %c0_i32 = arith.constant 0 : i32
    %c0_i32_0 = arith.constant 0 : i32
    %c0_i32_1 = arith.constant 0 : i32
    return %arg0, %c0_i32, %c0_i32_0 : i32, i32, i32
  }
}

</mosaic_0001>

<bundles_post_ra>
// kernel: double_conv_forward.1
= control target key start
LH: loop header
LB: loop body
LE: loop exit
PB: predicated region body
PF: predicated region fallthrough
CT: control target
= control target key end

     0   :  { %s1228_s21 = smov 0   ;;  %s1485_s0 = inlined_call_operand.vmem [shape: f32[2,4,256], index: 0, kind: input, shape index: {}]   ;;  %s1486_s1 = inlined_call_operand.vmem [shape: f32[9,256], index: 1, kind: input, shape index: {}]   ;;  %s1487_s2 = inlined_call_operand.vmem [shape: bf16[8,36], index: 2, kind: input, shape index: {}]   ;;  %s1488_s3 = inlined_call_operand.vmem [shape: f32[8,1], index: 3, kind: input, shape index: {}]   ;;  %s1489_s4 = inlined_call_operand.vmem [shape: bf16[8,72], index: 4, kind: input, shape index: {}]   ;;  %s1490_s5 = inlined_call_operand.vmem [shape: f32[8,1], index: 5, kind: input, shape index: {}]   ;;  %s1491_s6 = inlined_call_operand.vmem [shape: f32[2,8,256], index: 6, kind: output, shape index: {}]  }
   0x1 LB: > { %s1054_s22 = sadd.s32 4294967295, %s1182_s21   ;;  %p1058_p0 = scmp.ge.s32.totalorder %s1182_s21, 1  ;;  %s1182_s21 = sphi %s1228_s21, %s16_s21  }
   0x2   : > { %p212_p1 = scmp.lt.s32.totalorder %s1182_s21, 3 }
   0x4   : > { %p213_p2 = pnand %p1058_p0, %p212_p1 }
   0x5   : > { %p242_p3 = scmp.lt.s32.totalorder (!%p213_p2), %s1054_s22, 1  ;;  %s1184_s29 = smov (!%p213_p2), 127  }
   0x6   : > { %216 = sbr.rel (%p213_p2) target bundleno = 728 (0x2d8), region = 44  ;;  %s1185_s30 = smov (!%p213_p2), 111  }
   0x7   : > { %s1186_s7 = smov (!%p213_p2), 112   ;;  %s1187_s8 = smov (!%p213_p2), 113  }
   0x8   : > { %s1188_s9 = smov (!%p213_p2), 16   ;;  %s1189_s10 = smov (!%p213_p2), 1  }
   0x9   : > { %s1190_s11 = smov (!%p213_p2), 17   ;;  %s1191_s12 = smov (!%p213_p2), 15  }
   0xb   : > { %v261_v0 = vlaneseq  ;;  %s1493_s22 = smov (!%p242_p3, %s1054_s22), 1  ;;  %v1070_v4 = vld [vmem:[%s1486_s1 + $0x4] ss:$8 sm:$0x3]  ;;  %v1192_v13 = vmov 0   ;;  %vm577_vm6 = vcmask 1041408  }
   0xc   : > { %s1119_s23 = sshll.u32 %s1493_s22, 3  ;;  %616 = vmatprep.mubr.bf16.mxu0 %v1192_v13  ;;  %1166 = vset.pattern.permute.xlu0 %v1192_v13  ;;  %v542_v14 = vld [vmem:[%s1488_s3] sm:$0xff]  ;;  %v1078_v22 = vld [vmem:[%s1486_s1 + $0x10] ss:$8 sm:$0x3]  ;;  %vm573_vm9 = vcmask 293888  }
   0xd   : > { %v269_v1 = vshrl.u32 %v261_v0, 7  ;;  %s246_s26 = scalar_lea.vmem %s1485_s0, %s1119_s23  ;;  %986 = vmatprep.mubr.bf16.mxu1 %v1192_v13  ;;  %v1270_v15 = vand.u32 127, %v261_v0  ;;  %v1072_v16 = vld [vmem:[%s1486_s1 + $0x5] ss:$8 sm:$0x3]  ;;  %vm947_vm10 = vcmask 1043456  }
   0xe   : > { %v253_v5 = vld [vmem:[%s246_s26] sm:$0xff]  ;;  %vm943_vm11 = vcmask 588800  }
   0xf   : > { %v1239_v2 = vsub.s32 0, %v269_v1  ;;  %v1241_v3 = vsub.s32 1, %v269_v1  ;;  %410 = vrot.lane.b32.xlu1 %v253_v5, %s1184_s29  ;;  %505 = vrot.lane.b32.xlu0 %v253_v5, %s1185_s30  ;;  %v255_v6 = vcombine.high %v253_v5, %v253_v5  ;;  %vm414_vm0 = vcmp.lt.s32.totalorder %v1270_v15, 127  ;;  %v1076_v21 = vld [vmem:[%s1486_s1 + $0x7] ss:$8 sm:$0x3] }
  0x10   : > { %vm477_vm1 = vcmp.lt.s32.totalorder %v1270_v15, 112  ;;  %vm509_vm2 = vcmp.lt.s32.totalorder %v1270_v15, 111  ;;  %v1074_v28 = vld [vmem:[%s1486_s1 + $0x6] ss:$8 sm:$0x3]  ;;  %vm446_vm3 = vcmp.lt.s32.totalorder %v1270_v15, 113 }
  0x11   : > { %v390_v7 = vrot.slane %v1070_v4, %v1239_v2  ;;  %v394_v8 = vrot.slane %v1070_v4, %v1241_v3  ;;  %v423_v19 = vrot.slane %v1072_v16, %v1239_v2  ;;  %v427_v20 = vrot.slane %v1072_v16, %v1241_v3  ;;  %v1064_v47 = vld [vmem:[%s1486_s1 + $0x1] ss:$8 sm:$0x3]  ;;  %v1068_v60 = vld [vmem:[%s1486_s1 + $0x3] ss:$8 sm:$0x3] }
  0x12   : > { %v486_v27 = vrot.slane %v1076_v21, %v1239_v2  ;;  %v490_v31 = vrot.slane %v1076_v21, %v1241_v3  ;;  %v518_v32 = vrot.slane %v1078_v22, %v1239_v2  ;;  %v522_v33 = vrot.slane %v1078_v22, %v1241_v3  ;;  %v1066_v21 = vld [vmem:[%s1486_s1 + $0x2] ss:$8 sm:$0x3] }
  0x13   : > { %v395_v9 = vcombine.low %v390_v7, %v394_v8  ;;  %473 = vrot.lane.b32.xlu0 %v253_v5, %s1186_s7  ;;  %412 = vrot.lane.b32.xlu1 %v255_v6, %s1184_s29  ;;  %v455_v37 = vrot.slane %v1074_v28, %v1239_v2  ;;  %v459_v38 = vrot.slane %v1074_v28, %v1241_v3  ;;  %vm293_vm4 = vcmp.lt.s32.totalorder %v1270_v15, 16  ;;  %v266_v8 = vld [vmem:[%s1486_s1] ss:$8 sm:$0x3] }
  0x14   : > { %v302_v55 = vrot.slane %v1064_v47, %v1239_v2  ;;  %v306_v59 = vrot.slane %v1064_v47, %v1241_v3  ;;  %vm356_vm5 = vcmp.lt.s32.totalorder %v1270_v15, 1  ;;  %v369_v7 = vrot.slane %v1068_v60, %v1241_v3  ;;  %v536_v47 = vld [vmem:[%s1487_s2] sm:$0xf] }
  0x15   : > { %v397_v10 = vmul.f32 %v395_v9, %v253_v5  ;;  %vm263_vm7 = vcmp.lt.s32.totalorder %v1270_v15, 17  ;;  %vm325_vm8 = vcmp.lt.s32.totalorder %v1270_v15, 15 }
  0x17   : > { %v399_v11 = vcombine.high %v397_v10, %v397_v10  ;;  %475 = vrot.lane.b32.xlu1 %v255_v6, %s1186_s7  ;;  %507 = vrot.lane.b32.xlu0 %v255_v6, %s1185_s30 }
  0x19   : > { %v1125_v12 = vpack.c.bf16 %v399_v11, %v397_v10 }
  0x1b   : > { %409 = vst [vmem:[#allocation2 + $0x20] sm:$0x33] %v1125_v12  ;;  %444 = vrot.lane.b32.xlu1 %v255_v6, %s1187_s8  ;;  %442 = vrot.lane.b32.xlu0 %v253_v5, %s1187_s8 }
  0x1f   : > { %291 = vrot.lane.b32.xlu1 %v255_v6, %s1188_s9  ;;  %289 = vrot.lane.b32.xlu0 %v253_v5, %s1188_s9 }
  0x23   : > { %354 = vrot.lane.b32.xlu1 %v255_v6, %s1189_s10  ;;  %352 = vrot.lane.b32.xlu0 %v253_v5, %s1189_s10 }
  0x27   : > { %259 = vrot.lane.b32.xlu1 %v255_v6, %s1190_s11  ;;  %257 = vrot.lane.b32.xlu0 %v253_v5, %s1190_s11 }
  0x2b   : > { %323 = vrot.lane.b32.xlu1 %v255_v6, %s1191_s12  ;;  %321 = vrot.lane.b32.xlu0 %v253_v5, %s1191_s12  ;;  %v365_v6 = vrot.slane %v1068_v60, %v1239_v2 }
  0x2f   : > { %545 = vperm.xlu0 %1166, %v542_v14   ;;  %v271_v14 = vrot.slane %v266_v8, %v1239_v2 }
  0x81   : > { %v411_v17 = vpop.permute.xlu1 %410  ;;  %v506_v18 = vpop.permute.xlu0 %505 }
  0x85   : > { %v474_v23 = vpop.permute.xlu0 %473  ;;  %v413_v24 = vpop.permute.xlu1 %412 }
  0x86   : > { %v415_v25 = vsel %vm414_vm0, %v411_v17, %v413_v24  ;;  %v416_v26 = vsel %vm414_vm0, %v413_v24, %v411_v17 }
  0x87   : > { %v430_v29 = vmul.f32 %v423_v19, %v415_v25  ;;  %v431_v30 = vmul.f32 %v427_v20, %v416_v26  ;;  %v275_v20 = vrot.slane %v266_v8, %v1241_v3  ;;  %v1101_v8 = vld [vmem:[%s1486_s1 + $0x7] ss:$8 sm:$0x3] }
  0x89   : > { %v1126_v34 = vpack.c.bf16 %v431_v30, %v430_v29  ;;  %v476_v35 = vpop.permute.xlu1 %475  ;;  %v508_v36 = vpop.permute.xlu0 %507 }
  0x8a   : > { %v478_v39 = vsel %vm477_vm1, %v474_v23, %v476_v35  ;;  %v479_v40 = vsel %vm477_vm1, %v476_v35, %v474_v23  ;;  %v510_v41 = vsel %vm509_vm2, %v506_v18, %v508_v36  ;;  %v511_v42 = vsel %vm509_vm2, %v508_v36, %v506_v18 }
  0x8b   : > { %v439_v43 = vrot.slane %v1126_v34, 6  ;;  %v493_v44 = vmul.f32 %v486_v27, %v478_v39  ;;  %v494_v45 = vmul.f32 %v490_v31, %v479_v40  ;;  %v525_v46 = vmul.f32 %v518_v32, %v510_v41 }
  0x8c   : > { %v526_v48 = vmul.f32 %v522_v33, %v511_v42  ;;  %v334_v31 = vrot.slane %v1066_v21, %v1239_v2  ;;  %v338_v35 = vrot.slane %v1066_v21, %v1241_v3 }
  0x8d   : > { %441 = vst [vmem:[#allocation2 + $0x20] sm:$0xcc] %v439_v43  ;;  %v1128_v49 = vpack.c.bf16 %v494_v45, %v493_v44  ;;  %v445_v50 = vpop.permute.xlu1 %444  ;;  %v443_v51 = vpop.permute.xlu0 %442 }
  0x8e   : > { %v1129_v52 = vpack.c.bf16 %v526_v48, %v525_v46  ;;  %v447_v53 = vsel %vm446_vm3, %v443_v51, %v445_v50  ;;  %v448_v54 = vsel %vm446_vm3, %v445_v50, %v443_v51 }
  0x8f   : > { %v502_v56 = vrot.slane %v1128_v49, 6  ;;  %v462_v57 = vmul.f32 %v455_v37, %v447_v53  ;;  %v463_v58 = vmul.f32 %v459_v38, %v448_v54 }
  0x90   : > { %535 = vst [vmem:[#allocation2 + $0x18] sm:$0x33] %v1129_v52 }
  0x91   : > { %504 = vst [vmem:[#allocation2 + $0x10] sm:$0xcc] %v502_v56  ;;  %v1127_v61 = vpack.c.bf16 %v463_v58, %v462_v57  ;;  %v292_v62 = vpop.permute.xlu1 %291  ;;  %v290_v63 = vpop.permute.xlu0 %289  ;;  %v892_v57 = vld [vmem:[%s1490_s5] sm:$0xff]  ;;  %v1103_v58 = vld [vmem:[%s1486_s1 + $0x10] ss:$8 sm:$0x3] }
  0x92   : > { %v294_v0 = vsel %vm293_vm4, %v290_v63, %v292_v62  ;;  %v295_v1 = vsel %vm293_vm4, %v292_v62, %v290_v63  ;;  %v868_v62 = vrot.slane %v1103_v58, %v1241_v3 }
  0x93   : > { %472 = vst [vmem:[#allocation2 + $0x10] sm:$0x33] %v1127_v61  ;;  %v309_v4 = vmul.f32 %v302_v55, %v295_v1  ;;  %v310_v5 = vmul.f32 %v306_v59, %v294_v0  ;;  %v864_v61 = vrot.slane %v1103_v58, %v1239_v2 }
  0x95   : > { %v1122_v9 = vpack.c.bf16 %v310_v5, %v309_v4  ;;  %v355_v10 = vpop.permute.xlu1 %354  ;;  %v353_v11 = vpop.permute.xlu0 %352 }
  0x96   : > { %v357_v12 = vsel %vm356_vm5, %v353_v11, %v355_v10  ;;  %v358_v13 = vsel %vm356_vm5, %v355_v10, %v353_v11 }
  0x97   : > { %v318_v16 = vrot.slane %v1122_v9, 6  ;;  %v372_v17 = vmul.f32 %v365_v6, %v358_v13  ;;  %v373_v18 = vmul.f32 %v369_v7, %v357_v12  ;;  %v541_v19 = vld [vmem:[#allocation2 + $0x18] sm:$0x33]  ;;  %v1099_v6 = vld [vmem:[%s1486_s1 + $0x6] ss:$8 sm:$0x3] }
  0x98   : > { %v1085_v22 = vcombine.high %v541_v19, %v541_v19  ;;  %v1084_v23 = vcombine.low %v541_v19, %v541_v19  ;;  %v806_v13 = vrot.slane %v1099_v6, %v1239_v2  ;;  %v839_v19 = vrot.slane %v1101_v8, %v1241_v3 }
  0x99   : > { %320 = vst [vmem:[#allocation2 + $0x8] sm:$0xcc] %v318_v16  ;;  %v1124_v24 = vpack.c.bf16 %v373_v18, %v372_v17  ;;  %v260_v25 = vpop.permute.xlu1 %259  ;;  %v258_v26 = vpop.permute.xlu0 %257  ;;  %v810_v16 = vrot.slane %v1099_v6, %v1241_v3  ;;  %v835_v18 = vrot.slane %v1101_v8, %v1239_v2 }
  0x9a   : > { %1086 = vmatprep.subr.msk.bf16.mxu0 %vm577_vm6, %v1085_v22  ;;  %v264_v27 = vsel %vm263_vm7, %v258_v26, %v260_v25  ;;  %v265_v28 = vsel %vm263_vm7, %v260_v25, %v258_v26  ;;  %v579_v29 = vsel %vm577_vm6, %v1084_v23, 0  ;;  %v1170_v30 = vld [vmem:[#allocation2 + $0x24] ss:$-16 sps:$4 sm:$0xff]   ;;  %v1172_v39 = vld [vmem:[#allocation2 + $0x20] ss:$-16 sps:$4 sm:$0xff]  }
  0x9b   : > { %v381_v32 = vrot.slane %v1124_v24, 6  ;;  %v278_v33 = vmul.f32 %v271_v14, %v265_v28  ;;  %v279_v34 = vmul.f32 %v275_v20, %v264_v27  ;;  %595 = vmatpush1.bf16.msra.mxu0 %v579_v29  ;;  %v1095_v14 = vld [vmem:[%s1486_s1 + $0x4] ss:$8 sm:$0x3] }
  0x9c   : > { %596 = vmatprep.subr.bf16.mxu0 %v1170_v30  ;;  %v1097_v20 = vld [vmem:[%s1486_s1 + $0x5] ss:$8 sm:$0x3]  ;;  %v752_v24 = vrot.slane %v1095_v14, %v1241_v3  ;;  %v748_v25 = vrot.slane %v1095_v14, %v1239_v2 }
  0x9d   : > { %383 = vst [vmem:[#allocation2] sm:$0xcc] %v381_v32  ;;  %v1121_v36 = vpack.c.bf16 %v279_v34, %v278_v33  ;;  %v324_v37 = vpop.permute.xlu1 %323  ;;  %v322_v38 = vpop.permute.xlu0 %321  ;;  %v777_v28 = vrot.slane %v1097_v20, %v1239_v2  ;;  %v781_v29 = vrot.slane %v1097_v20, %v1241_v3 }
  0x9e   : > { %v326_v40 = vsel %vm325_vm8, %v322_v38, %v324_v37  ;;  %v327_v41 = vsel %vm325_vm8, %v324_v37, %v322_v38 }
  0x9f   : > { %288 = vst [vmem:[#allocation2 + $0x8] sm:$0x33] %v1121_v36  ;;  %v341_v42 = vmul.f32 %v334_v31, %v327_v41  ;;  %v342_v43 = vmul.f32 %v338_v35, %v326_v40  ;;  %597 = vmatpush1.bf16.msra.mxu0 %v1172_v39 }
  0xa1   : > { %v1123_v44 = vpack.c.bf16 %v342_v43, %v341_v42 }
  0xa3   : > { %351 = vst [vmem:[#allocation2] sm:$0x33] %v1123_v44  ;;  %v1091_v44 = vld [vmem:[%s1486_s1 + $0x2] ss:$8 sm:$0x3] }
  0xaa   : > { %v1173_v45 = vld [vmem:[#allocation2 + $0xc] ss:$-8 sps:$4 sm:$0xff]   ;;  %v1175_v46 = vld [vmem:[#allocation2 + $0x8] ss:$-8 sps:$4 sm:$0xff]   ;;  %v546_v48 = vpop.permute.xlu0 %545 }
  0xab   : > { %598 = vmatprep.subr.bf16.mxu0 %v1173_v45  ;;  %v1093_v45 = vld [vmem:[%s1486_s1 + $0x3] ss:$8 sm:$0x3] }
  0xac   : > { %599 = vmatpush1.bf16.msra.mxu0 %v1175_v46 }
  0xaf   : > { %1087 = vmatmul.mubr.msk.bf16.vlgmr.msra.gmra.mxu0 %vm573_vm9, %v536_v47 }
 0x16f   : > { %v618_v49 = vpop.f32.mrf.mxu0 }
 0x170   : > { %v619_v50 = vadd.f32 %v618_v49, %v546_v48 }
 0x171   : > { %v620_v51 = vpop.f32.mrf.mxu0 }
 0x172   : > { %v1357_v52 = vmax.f32 %v619_v50, 0.0  ;;  %v621_v53 = vadd.f32 %v620_v51, %v546_v48  ;;  %v696_v50 = vrot.slane %v1091_v44, %v1239_v2  ;;  %v700_v51 = vrot.slane %v1091_v44, %v1241_v3 }
 0x173   : > { %v622_v54 = vpop.f32.mrf.mxu0 }
 0x174   : > { %795 = vrot.lane.b32.xlu0 %v1357_v52, %s1187_s8  ;;  %853 = vrot.lane.b32.xlu1 %v1357_v52, %s1185_s30  ;;  %v1363_v56 = vmax.f32 %v621_v53, 0.0  ;;  %v755_v43 = vmul.f32 %v748_v25, %v1357_v52  ;;  %v729_v53 = vrot.slane %v1093_v45, %v1241_v3 }
 0x175   : > { %v623_v55 = vpop.f32.mrf.mxu0 }
 0x176   : > { %v756_v42 = vmul.f32 %v752_v24, %v1363_v56 }
 0x178   : > { %824 = vrot.lane.b32.xlu0 %v1357_v52, %s1186_s7  ;;  %855 = vrot.lane.b32.xlu1 %v1363_v56, %s1185_s30  ;;  %s1120_s30 = sshll.u32 %s1493_s22, 4 }
 0x17c   : > { %766 = vrot.lane.b32.xlu0 %v1357_v52, %s1184_s29  ;;  %797 = vrot.lane.b32.xlu1 %v1363_v56, %s1187_s8  ;;  %s251_s8 = scalar_lea.vmem %s1491_s6, %s1120_s30 }
 0x180   : > { %685 = vrot.lane.b32.xlu0 %v1357_v52, %s1191_s12  ;;  %826 = vrot.lane.b32.xlu1 %v1363_v56, %s1186_s7 }
 0x184   : > { %714 = vrot.lane.b32.xlu0 %v1357_v52, %s1189_s10  ;;  %768 = vrot.lane.b32.xlu1 %v1363_v56, %s1184_s29 }
 0x188   : > { %627 = vrot.lane.b32.xlu0 %v1357_v52, %s1190_s11  ;;  %687 = vrot.lane.b32.xlu1 %v1363_v56, %s1191_s12 }
 0x18c   : > { %656 = vrot.lane.b32.xlu0 %v1357_v52, %s1188_s9  ;;  %716 = vrot.lane.b32.xlu1 %v1363_v56, %s1189_s10  ;;  %v725_v52 = vrot.slane %v1093_v45, %v1239_v2 }
 0x190   : > { %895 = vperm.xlu0 %1166, %v892_v57   ;;  %629 = vrot.lane.b32.xlu1 %v1363_v56, %s1190_s11 }
 0x194   : > { %658 = vrot.lane.b32.xlu1 %v1363_v56, %s1188_s9 }
 0x1e6   : > { %v796_v59 = vpop.permute.xlu0 %795  ;;  %v854_v60 = vpop.permute.xlu1 %853 }
 0x1ea   : > { %v825_v63 = vpop.permute.xlu0 %824  ;;  %v856_v0 = vpop.permute.xlu1 %855 }
 0x1eb   : > { %v857_v1 = vsel %vm509_vm2, %v854_v60, %v856_v0  ;;  %v858_v4 = vsel %vm509_vm2, %v856_v0, %v854_v60  ;;  %v633_v0 = vld [vmem:[%s1486_s1] ss:$8 sm:$0x3] }
 0x1ec   : > { %v871_v5 = vmul.f32 %v864_v61, %v857_v1  ;;  %v872_v7 = vmul.f32 %v868_v62, %v858_v4  ;;  %v1089_v1 = vld [vmem:[%s1486_s1 + $0x1] ss:$8 sm:$0x3]  ;;  %v642_v8 = vrot.slane %v633_v0, %v1241_v3 }
 0x1ee   : > { %v767_v9 = vpop.permute.xlu0 %766  ;;  %v798_v10 = vpop.permute.xlu1 %797  ;;  %v1148_v11 = vpack.c.bf16 %v872_v7, %v872_v7  ;;  %v1147_v12 = vpack.c.bf16 %v871_v5, %v871_v5  ;;  %v638_v7 = vrot.slane %v633_v0, %v1239_v2 }
 0x1ef   : > { %v799_v21 = vsel %vm446_vm3, %v796_v59, %v798_v10  ;;  %v800_v22 = vsel %vm446_vm3, %v798_v10, %v796_v59  ;;  %v671_v10 = vrot.slane %v1089_v1, %v1241_v3 }
 0x1f0   : > { %1115 = vmatprep.subr.msk.bf16.mxu1 %vm947_vm10, %v1148_v11  ;;  %v949_v17 = vsel %vm947_vm10, %v1147_v12, 0  ;;  %v813_v30 = vmul.f32 %v806_v13, %v799_v21  ;;  %v814_v31 = vmul.f32 %v810_v16, %v800_v22  ;;  %v882_v22 = vld [vmem:[%s1489_s4] sm:$0xf] }
 0x1f1   : > { %961 = vmatpush1.bf16.msra.mxu1 %v949_v17 }
 0x1f2   : > { %v827_v23 = vpop.permute.xlu1 %826  ;;  %v686_v32 = vpop.permute.xlu0 %685 }
 0x1f3   : > { %v828_v26 = vsel %vm477_vm1, %v825_v63, %v827_v23  ;;  %v829_v27 = vsel %vm477_vm1, %v827_v23, %v825_v63 }
 0x1f4   : > { %v842_v33 = vmul.f32 %v835_v18, %v828_v26  ;;  %v843_v34 = vmul.f32 %v839_v19, %v829_v27 }
 0x1f6   : > { %v769_v35 = vpop.permute.xlu1 %768  ;;  %v1146_v36 = vpack.c.bf16 %v843_v34, %v814_v31  ;;  %v1145_v37 = vpack.c.bf16 %v842_v33, %v813_v30  ;;  %v715_v46 = vpop.permute.xlu0 %714 }
 0x1f7   : > { %v770_v38 = vsel %vm414_vm0, %v767_v9, %v769_v35  ;;  %v771_v39 = vsel %vm414_vm0, %v769_v35, %v767_v9  ;;  %v667_v9 = vrot.slane %v1089_v1, %v1239_v2 }
 0x1f8   : > { %v784_v40 = vmul.f32 %v777_v28, %v770_v38  ;;  %v785_v41 = vmul.f32 %v781_v29, %v771_v39  ;;  %962 = vmatprep.subr.bf16.mxu1 %v1146_v36 }
 0x1f9   : > { %963 = vmatpush1.bf16.msra.mxu1 %v1145_v37 }
 0x1fa   : > { %v688_v47 = vpop.permute.xlu1 %687  ;;  %v1144_v48 = vpack.c.bf16 %v785_v41, %v756_v42  ;;  %v1143_v49 = vpack.c.bf16 %v784_v40, %v755_v43  ;;  %v628_v59 = vpop.permute.xlu0 %627 }
 0x1fb   : > { %v689_v54 = vsel %vm325_vm8, %v686_v32, %v688_v47  ;;  %v690_v55 = vsel %vm325_vm8, %v688_v47, %v686_v32 }
 0x1fc   : > { %964 = vmatprep.subr.bf16.mxu1 %v1144_v48  ;;  %v703_v60 = vmul.f32 %v696_v50, %v690_v55  ;;  %v704_v61 = vmul.f32 %v700_v51, %v689_v54 }
 0x1fd   : > { %965 = vmatpush1.bf16.msra.mxu1 %v1143_v49 }
 0x1fe   : > { %v717_v56 = vpop.permute.xlu1 %716  ;;  %v657_v13 = vpop.permute.xlu0 %656 }
 0x1ff   : > { %v718_v57 = vsel %vm356_vm5, %v715_v46, %v717_v56  ;;  %v719_v58 = vsel %vm356_vm5, %v717_v56, %v715_v46 }
 0x200   : > { %v732_v62 = vmul.f32 %v725_v52, %v719_v58  ;;  %v733_v63 = vmul.f32 %v729_v53, %v718_v57 }
 0x202   : > { %v630_v4 = vpop.permute.xlu1 %629  ;;  %v1142_v5 = vpack.c.bf16 %v733_v63, %v704_v61  ;;  %v1141_v6 = vpack.c.bf16 %v732_v62, %v703_v60 }
 0x203   : > { %v631_v11 = vsel %vm263_vm7, %v628_v59, %v630_v4  ;;  %v632_v12 = vsel %vm263_vm7, %v630_v4, %v628_v59 }
 0x204   : > { %966 = vmatprep.subr.bf16.mxu1 %v1142_v5  ;;  %v645_v18 = vmul.f32 %v638_v7, %v632_v12  ;;  %v646_v2 = vmul.f32 %v642_v8, %v631_v11 }
 0x205   : > { %967 = vmatpush1.bf16.msra.mxu1 %v1141_v6 }
 0x206   : > { %v659_v14 = vpop.permute.xlu1 %658 }
 0x207   : > { %v660_v16 = vsel %vm293_vm4, %v657_v13, %v659_v14  ;;  %v661_v17 = vsel %vm293_vm4, %v659_v14, %v657_v13 }
 0x208   : > { %v674_v19 = vmul.f32 %v667_v9, %v661_v17  ;;  %v675_v3 = vmul.f32 %v671_v10, %v660_v16 }
 0x20a   : > { %v1140_v20 = vpack.c.bf16 %v675_v3, %v646_v2  ;;  %v1139_v21 = vpack.c.bf16 %v674_v19, %v645_v18 }
 0x20b   : > { %v896_v23 = vpop.permute.xlu0 %895 }
 0x20c   : > { %968 = vmatprep.subr.bf16.mxu1 %v1140_v20 }
 0x20d   : > { %969 = vmatpush1.bf16.msra.mxu1 %v1139_v21 }
 0x210   : > { %1116 = vmatmul.mubr.msk.bf16.vlgmr.msra.gmra.mxu1 %vm943_vm11, %v882_v22 }
 0x2d0   : > { %v988_v24 = vpop.f32.mrf.mxu1 }
 0x2d1   : > { %v989_v25 = vadd.f32 %v988_v24, %v896_v23 }
 0x2d2   : > { %v990_v15 = vpop.f32.mrf.mxu1 }
 0x2d3   : > { %v995_v26 = vmax.f32 %v989_v25, 0.0  ;;  %v991_v27 = vadd.f32 %v990_v15, %v896_v23 }
 0x2d4   : > { %v992_v28 = vpop.f32.mrf.mxu1 }
 0x2d5   : > { %997 = vst [vmem:[%s251_s8] sm:$0xff] %v995_v26  ;;  %v996_v29 = vmax.f32 %v991_v27, 0.0 }
 0x2d6   : > { %v993_v30 = vpop.f32.mrf.mxu1 }
 0x2d7   : > { %998 = vst [vmem:[%s251_s8 + $0x8] sm:$0xff] %v996_v29 }
 0x2d8 PF: > { %s16_s21 = sadd.s32 1, %s1182_s21  }
 0x2d9   : > { %p13_p4 = scmp.ge.s32.totalorder %s16_s21, 4  }
 0x2db   :  { %15 = sbr.rel (!%p13_p4) target bundleno = 1 (0x1), region = 82 }

</bundles_post_ra>
